<compile_context>
chip_gen: v5e
topology: v5e:2x2
jax: 0.10.0
libtpu: 0.0.40
codegen_flags: <defaults>
</compile_context>

<pallas_src>
import functools

import jax
import jax.numpy as jnp
import numpy as np
from jax import lax
from jax.experimental import pallas as pl
from jax.experimental.pallas import tpu as pltpu


# ----------------------------------------------------------------------------
# Fused Pallas kernel: the whole GraphTripleConvNet_prev stack, single launch
# ----------------------------------------------------------------------------
def _fused_gconv_net_kernel(
    # inputs
    obj_in_ref, pred_in_ref, sidx_ref, oidx_ref,
    w1_ref, b1_ref, w2_ref, b2_ref,
    # outputs
    obj_out_ref, pred_out_ref,
    *, H, Dout, L,
):
    T = pred_in_ref.shape[0]
    N = obj_in_ref.shape[0]

    # ---- edge-invariant work, computed once ----
    colN = lax.broadcasted_iota(jnp.int32, (T, N), 1)                 # colN[t, n] = n
    s_oh = (sidx_ref[...] == colN).astype(jnp.bfloat16)               # (T, N), exact 0/1
    o_oh = (oidx_ref[...] == colN).astype(jnp.bfloat16)               # (T, N)
    so_oh = jnp.concatenate([s_oh, o_oh], axis=0)                     # (2T, N) bf16

    # per-object appearance counts (exact small ints) and their reciprocal
    cnt = lax.dot_general(so_oh, jnp.ones((2 * T, 1), jnp.bfloat16),
                          (((0,), (0,)), ((), ())),
                          preferred_element_type=jnp.float32)          # (N, 1)
    inv_cnt = 1.0 / jnp.maximum(cnt, 1.0)                              # (N, 1) f32

    def layer(l, carry):
        obj, pred = carry                                              # f32 (N,D), (T,Dp)
        w1 = w1_ref[l]                                                 # (2D+Dp, 2H+Dout) bf16
        b1 = b1_ref[l]                                                 # (1, 2H+Dout)     f32
        w2 = w2_ref[l]                                                 # (H, Dout)        bf16
        b2 = b2_ref[l]                                                 # (1, Dout)        f32

        # gather obj_vecs[s_idx] / obj_vecs[o_idx]: one fused (2T,N)x(N,D) MXU matmul
        g = jnp.dot(so_oh, obj.astype(jnp.bfloat16),
                    preferred_element_type=jnp.float32)                # (2T, D)
        cat = jnp.concatenate([g[:T], pred, g[T:]], axis=1)            # (T, 2D+Dp) f32

        # collapsed net1 (Linear;Linear, no activation); columns = [new_s|new_o|new_p]
        t2 = jnp.dot(cat.astype(jnp.bfloat16), w1,
                     preferred_element_type=jnp.float32) + b1          # (T, 2H+Dout)
        new_p = t2[:, 2 * H:2 * H + Dout]                              # (T, Dout)

        # scatter-add avg pooling: one transposed-LHS K=2T matmul on the SAME
        # stacked bf16 one-hot (no transposed copies kept around)
        sn = jnp.concatenate([t2[:, 0:H], t2[:, H:2 * H]], axis=0)     # (2T, H) = [s; o]
        pooled = lax.dot_general(so_oh, sn.astype(jnp.bfloat16),
                                 (((0,), (0,)), ((), ())),
                                 preferred_element_type=jnp.float32)   # (N, H)
        pooled = pooled * inv_cnt

        # collapsed net2
        new_obj = jnp.dot(pooled.astype(jnp.bfloat16), w2,
                          preferred_element_type=jnp.float32) + b2     # (N, Dout)
        return new_obj, new_p

    obj0 = obj_in_ref[...]
    pred0 = pred_in_ref[...]
    obj_f, pred_f = lax.fori_loop(0, L, layer, (obj0, pred0), unroll=True)
    obj_out_ref[...] = obj_f
    pred_out_ref[...] = pred_f


# ----------------------------------------------------------------------------
# Wrapper: host-side weight collapse/stack + a single gridless pallas_call
# ----------------------------------------------------------------------------
def _vmem_limit_bytes():
    # Generation-aware scoped-VMEM limit (v5e/v6e: 128 MiB physical, v7x: 64 MiB).
    try:
        cap = int(pltpu.get_tpu_info().vmem_capacity_bytes)
    except Exception:
        cap = 64 * 1024 * 1024
    return int(min(max(cap - 8 * 1024 * 1024, 32 * 1024 * 1024), 100 * 1024 * 1024))


@functools.partial(jax.jit, static_argnames=("H", "Dout"))
def graph_triple_conv_net_prev(obj_vecs, pred_vecs, edges, layer_params, *, H, Dout):
    N, D = obj_vecs.shape
    T, Dp = pred_vecs.shape
    L = len(layer_params)
    assert D == Dout and Dp == Dout, "stacking layers requires D == Dp == Dout"

    s_idx = edges[:, 0:1].astype(jnp.int32)   # (T, 1)
    o_idx = edges[:, 1:2].astype(jnp.int32)   # (T, 1)

    # net1/net2 are Linear;Linear with no activation -> collapse each pair into a
    # single matmul; permute net1 output columns to [new_s | new_o | new_p] so the
    # [s|o] slab is lane-aligned (ends at 2H=128 for H=64). Pure column permutation.
    perm = jnp.concatenate([
        jnp.arange(0, H),                       # new_s
        jnp.arange(H + Dout, 2 * H + Dout),     # new_o
        jnp.arange(H, H + Dout),                # new_p
    ])
    w1 = jnp.stack([p["w1a"] @ p["w1b"] for p in layer_params])[:, :, perm]
    b1 = jnp.stack([p["b1a"] @ p["w1b"] + p["b1b"] for p in layer_params])[:, :, perm]
    w2 = jnp.stack([p["w2a"] @ p["w2b"] for p in layer_params])
    b2 = jnp.stack([p["b2a"] @ p["w2b"] + p["b2b"] for p in layer_params])
    w1 = w1.astype(jnp.bfloat16)    # bf16 MXU operands, f32 accumulation in-kernel
    w2 = w2.astype(jnp.bfloat16)
    b1 = b1.astype(jnp.float32)
    b2 = b2.astype(jnp.float32)

    kernel = functools.partial(_fused_gconv_net_kernel, H=H, Dout=Dout, L=L)
    vspec = pl.BlockSpec(memory_space=pltpu.MemorySpace.VMEM)

    return pl.pallas_call(
        kernel,
        out_shape=(
            jax.ShapeDtypeStruct((N, Dout), jnp.float32),
            jax.ShapeDtypeStruct((T, Dout), jnp.float32),
        ),
        in_specs=[vspec] * 8,
        out_specs=(vspec, vspec),
        compiler_params=pltpu.CompilerParams(
            vmem_limit_bytes=_vmem_limit_bytes(),
        ),
    )(obj_vecs, pred_vecs, s_idx, o_idx, w1, b1, w2, b2)


# ----------------------------------------------------------------------------
# Deterministic parameter initialization (kaiming-normal-ish, synthetic)
# ----------------------------------------------------------------------------
def init_layer_params(key, D, Dp, H, Dout):
    ks = jax.random.split(key, 8)

    def kaiming(k, shape):
        fan_in = shape[0]
        return (jax.random.normal(k, shape, jnp.float32)
                * jnp.sqrt(2.0 / fan_in)).astype(jnp.float32)

    def bias(k, n, fan_in):
        bound = 1.0 / jnp.sqrt(fan_in)
        return jax.random.uniform(k, (1, n), jnp.float32, -bound, bound)

    return {
        "w1a": kaiming(ks[0], (2 * D + Dp, H)), "b1a": bias(ks[1], H, 2 * D + Dp),
        "w1b": kaiming(ks[2], (H, 2 * H + Dout)), "b1b": bias(ks[3], 2 * H + Dout, H),
        "w2a": kaiming(ks[4], (H, H)), "b2a": bias(ks[5], H, H),
        "w2b": kaiming(ks[6], (H, Dout)), "b2b": bias(ks[7], Dout, H),
    }


# ----------------------------------------------------------------------------
# Pure-JAX f32 reference (mirrors the PyTorch forward) for a correctness check
# ----------------------------------------------------------------------------
def reference_layer(obj_vecs, pred_vecs, edges, p, *, H, Dout):
    N = obj_vecs.shape[0]
    s_idx = edges[:, 0]
    o_idx = edges[:, 1]
    t = jnp.concatenate([obj_vecs[s_idx], pred_vecs, obj_vecs[o_idx]], axis=1)
    h1 = t @ p["w1a"] + p["b1a"]
    t2 = h1 @ p["w1b"] + p["b1b"]
    new_s, new_p, new_o = t2[:, :H], t2[:, H:H + Dout], t2[:, H + Dout:2 * H + Dout]
    pooled = jnp.zeros((N, H), jnp.float32)
    pooled = pooled.at[s_idx].add(new_s).at[o_idx].add(new_o)
    counts = jnp.zeros((N,), jnp.float32).at[s_idx].add(1.0).at[o_idx].add(1.0)
    pooled = pooled / jnp.maximum(counts, 1.0)[:, None]
    new_obj = (pooled @ p["w2a"] + p["b2a"]) @ p["w2b"] + p["b2b"]
    return new_obj, new_p


def reference_net(obj_vecs, pred_vecs, edges, layer_params, *, H, Dout):
    for p in layer_params:
        obj_vecs, pred_vecs = reference_layer(
            obj_vecs, pred_vecs, edges, p, H=H, Dout=Dout)
    return obj_vecs, pred_vecs


if __name__ == "__main__":
    # Small shapes consistent with the module: Dout defaults to input_dim_obj,
    # and stacking layers requires input_dim_pred == Dout, so D == Dp == Dout.
    num_objs, num_triples = 16, 24
    D = Dp = Dout = 32
    H = 64
    num_layers = 3

    key = jax.random.PRNGKey(0)
    k_obj, k_pred, k_s, k_o, k_params = jax.random.split(key, 5)

    obj_vecs = jax.random.normal(k_obj, (num_objs, D), jnp.float32)
    pred_vecs = jax.random.normal(k_pred, (num_triples, Dp), jnp.float32)
    s_col = jax.random.randint(k_s, (num_triples, 1), 0, num_objs, jnp.int32)
    o_col = jax.random.randint(k_o, (num_triples, 1), 0, num_objs, jnp.int32)
    edges = jnp.concatenate([s_col, o_col], axis=1)  # (T, 2) int32

    layer_params = [
        init_layer_params(k, D, Dp, H, Dout)
        for k in jax.random.split(k_params, num_layers)
    ]

    new_obj, new_pred = graph_triple_conv_net_prev(
        obj_vecs, pred_vecs, edges, layer_params, H=H, Dout=Dout)
    jax.block_until_ready((new_obj, new_pred))

    ref_obj, ref_pred = reference_net(
        obj_vecs, pred_vecs, edges, layer_params, H=H, Dout=Dout)

    def rel_err(got, ref):
        got = np.asarray(got, dtype=np.float32)
        ref = np.asarray(ref, dtype=np.float32)
        return float(np.max(np.abs(got - ref)) / (np.max(np.abs(ref)) + 1e-6))

    # bf16 MXU operands (f32 accumulation) introduce small, expected quantization
    # error relative to the pure-f32 reference.
    err_o = rel_err(new_obj, ref_obj)
    err_p = rel_err(new_pred, ref_pred)
    assert err_o < 5e-2 and err_p < 5e-2, (err_o, err_p)

    print("KERNEL_OK")
</pallas_src>

<mosaic_0001>
module attributes {stable_mosaic.version = 11 : i64} {
  func.func @_fused_gconv_net_kernel(%arg0: memref<16x32xf32, #tpu.memory_space<vmem>>, %arg1: memref<24x32xf32, #tpu.memory_space<vmem>>, %arg2: memref<24x1xi32, #tpu.memory_space<vmem>>, %arg3: memref<24x1xi32, #tpu.memory_space<vmem>>, %arg4: memref<3x96x160xbf16, #tpu.memory_space<vmem>>, %arg5: memref<3x1x160xf32, #tpu.memory_space<vmem>>, %arg6: memref<3x64x32xbf16, #tpu.memory_space<vmem>>, %arg7: memref<3x1x32xf32, #tpu.memory_space<vmem>>, %arg8: memref<16x32xf32, #tpu.memory_space<vmem>>, %arg9: memref<24x32xf32, #tpu.memory_space<vmem>>) attributes {dimension_semantics = [], scalar_prefetch = 0 : i64, scratch_operands = 0 : i64, tpu.core_type = #tpu.core_type<tc>} {
    %0 = tpu.iota {dimensions = array<i32: 1>} : vector<24x16xi32>
    %c0 = arith.constant 0 : index
    %c0_0 = arith.constant 0 : index
    %1 = vector.load %arg2[%c0, %c0_0] : memref<24x1xi32, #tpu.memory_space<vmem>>, vector<24x1xi32>
    %2 = vector.broadcast %1 : vector<24x1xi32> to vector<24x16xi32>
    %3 = arith.cmpi eq, %2, %0 : vector<24x16xi32>
    %4 = arith.extui %3 : vector<24x16xi1> to vector<24x16xi32>
    %5 = arith.sitofp %4 : vector<24x16xi32> to vector<24x16xf32>
    %6 = arith.truncf %5 : vector<24x16xf32> to vector<24x16xbf16>
    %c0_1 = arith.constant 0 : index
    %c0_2 = arith.constant 0 : index
    %7 = vector.load %arg3[%c0_1, %c0_2] : memref<24x1xi32, #tpu.memory_space<vmem>>, vector<24x1xi32>
    %8 = vector.broadcast %7 : vector<24x1xi32> to vector<24x16xi32>
    %9 = arith.cmpi eq, %8, %0 : vector<24x16xi32>
    %10 = arith.extui %9 : vector<24x16xi1> to vector<24x16xi32>
    %11 = arith.sitofp %10 : vector<24x16xi32> to vector<24x16xf32>
    %12 = arith.truncf %11 : vector<24x16xf32> to vector<24x16xbf16>
    %13 = tpu.concatenate %6, %12 in 0 : vector<24x16xbf16>, vector<24x16xbf16> -> vector<48x16xbf16>
    %cst = arith.constant 1.000000e+00 : bf16
    %14 = vector.broadcast %cst : bf16 to vector<48x1xbf16>
    %cst_3 = arith.constant dense<0.000000e+00> : vector<16x1xf32>
    %15 = tpu.matmul %13, %14, %cst_3 {dimension_numbers = #tpu.dot_dimension_numbers<[0], [0], [1], [1], [0, 1, 1, 1], [], []>} : vector<48x16xbf16>, vector<48x1xbf16>, vector<16x1xf32> -> vector<16x1xf32>
    %cst_4 = arith.constant 1.000000e+00 : f32
    %16 = vector.broadcast %cst_4 : f32 to vector<16x1xf32>
    %17 = arith.maximumf %15, %16 : vector<16x1xf32>
    %cst_5 = arith.constant 1.000000e+00 : f32
    %18 = vector.broadcast %cst_5 : f32 to vector<16x1xf32>
    %19 = arith.divf %18, %17 : vector<16x1xf32>
    %c0_6 = arith.constant 0 : index
    %c0_7 = arith.constant 0 : index
    %20 = vector.load %arg0[%c0_6, %c0_7] : memref<16x32xf32, #tpu.memory_space<vmem>>, vector<16x32xf32>
    %c0_8 = arith.constant 0 : index
    %c0_9 = arith.constant 0 : index
    %21 = vector.load %arg1[%c0_8, %c0_9] : memref<24x32xf32, #tpu.memory_space<vmem>>, vector<24x32xf32>
    %c0_i32 = arith.constant 0 : i32
    %22 = arith.index_cast %c0_i32 : i32 to index
    %c0_10 = arith.constant 0 : index
    %c0_11 = arith.constant 0 : index
    %23 = vector.load %arg4[%22, %c0_10, %c0_11] : memref<3x96x160xbf16, #tpu.memory_space<vmem>>, vector<1x96x160xbf16>
    %24 = vector.shape_cast %23 : vector<1x96x160xbf16> to vector<96x160xbf16>
    %25 = arith.index_cast %c0_i32 : i32 to index
    %c0_12 = arith.constant 0 : index
    %c0_13 = arith.constant 0 : index
    %26 = vector.load %arg5[%25, %c0_12, %c0_13] : memref<3x1x160xf32, #tpu.memory_space<vmem>>, vector<1x1x160xf32>
    %27 = vector.shape_cast %26 : vector<1x1x160xf32> to vector<1x160xf32>
    %28 = arith.index_cast %c0_i32 : i32 to index
    %c0_14 = arith.constant 0 : index
    %c0_15 = arith.constant 0 : index
    %29 = vector.load %arg6[%28, %c0_14, %c0_15] : memref<3x64x32xbf16, #tpu.memory_space<vmem>>, vector<1x64x32xbf16>
    %30 = vector.shape_cast %29 : vector<1x64x32xbf16> to vector<64x32xbf16>
    %31 = arith.index_cast %c0_i32 : i32 to index
    %c0_16 = arith.constant 0 : index
    %c0_17 = arith.constant 0 : index
    %32 = vector.load %arg7[%31, %c0_16, %c0_17] : memref<3x1x32xf32, #tpu.memory_space<vmem>>, vector<1x1x32xf32>
    %33 = vector.shape_cast %32 : vector<1x1x32xf32> to vector<1x32xf32>
    %34 = arith.truncf %20 : vector<16x32xf32> to vector<16x32xbf16>
    %cst_18 = arith.constant dense<0.000000e+00> : vector<48x32xf32>
    %35 = tpu.matmul %13, %34, %cst_18 {dimension_numbers = #tpu.dot_dimension_numbers<[1], [0], [0], [1], [0, 0, 1, 1], [], []>} : vector<48x16xbf16>, vector<16x32xbf16>, vector<48x32xf32> -> vector<48x32xf32>
    %36 = vector.extract_strided_slice %35 {offsets = [0, 0], sizes = [24, 32], strides = [1, 1]} : vector<48x32xf32> to vector<24x32xf32>
    %37 = vector.extract_strided_slice %35 {offsets = [24, 0], sizes = [24, 32], strides = [1, 1]} : vector<48x32xf32> to vector<24x32xf32>
    %38 = tpu.concatenate %36, %21, %37 in 1 : vector<24x32xf32>, vector<24x32xf32>, vector<24x32xf32> -> vector<24x96xf32>
    %39 = arith.truncf %38 : vector<24x96xf32> to vector<24x96xbf16>
    %cst_19 = arith.constant dense<0.000000e+00> : vector<24x160xf32>
    %40 = tpu.matmul %39, %24, %cst_19 {dimension_numbers = #tpu.dot_dimension_numbers<[1], [0], [0], [1], [0, 0, 1, 1], [], []>} : vector<24x96xbf16>, vector<96x160xbf16>, vector<24x160xf32> -> vector<24x160xf32>
    %41 = vector.broadcast %27 : vector<1x160xf32> to vector<24x160xf32>
    %42 = arith.addf %40, %41 : vector<24x160xf32>
    %43 = vector.extract_strided_slice %42 {offsets = [0, 128], sizes = [24, 32], strides = [1, 1]} : vector<24x160xf32> to vector<24x32xf32>
    %44 = vector.extract_strided_slice %42 {offsets = [0, 0], sizes = [24, 64], strides = [1, 1]} : vector<24x160xf32> to vector<24x64xf32>
    %45 = vector.extract_strided_slice %42 {offsets = [0, 64], sizes = [24, 64], strides = [1, 1]} : vector<24x160xf32> to vector<24x64xf32>
    %46 = tpu.concatenate %44, %45 in 0 : vector<24x64xf32>, vector<24x64xf32> -> vector<48x64xf32>
    %47 = arith.truncf %46 : vector<48x64xf32> to vector<48x64xbf16>
    %cst_20 = arith.constant dense<0.000000e+00> : vector<16x64xf32>
    %48 = tpu.matmul %13, %47, %cst_20 {dimension_numbers = #tpu.dot_dimension_numbers<[0], [0], [1], [1], [0, 1, 1, 1], [], []>} : vector<48x16xbf16>, vector<48x64xbf16>, vector<16x64xf32> -> vector<16x64xf32>
    %49 = vector.broadcast %19 : vector<16x1xf32> to vector<16x64xf32>
    %50 = arith.mulf %48, %49 : vector<16x64xf32>
    %51 = arith.truncf %50 : vector<16x64xf32> to vector<16x64xbf16>
    %cst_21 = arith.constant dense<0.000000e+00> : vector<16x32xf32>
    %52 = tpu.matmul %51, %30, %cst_21 {dimension_numbers = #tpu.dot_dimension_numbers<[1], [0], [0], [1], [0, 0, 1, 1], [], []>} : vector<16x64xbf16>, vector<64x32xbf16>, vector<16x32xf32> -> vector<16x32xf32>
    %53 = vector.broadcast %33 : vector<1x32xf32> to vector<16x32xf32>
    %54 = arith.addf %52, %53 : vector<16x32xf32>
    %c1_i32 = arith.constant 1 : i32
    %55 = arith.index_cast %c1_i32 : i32 to index
    %c0_22 = arith.constant 0 : index
    %c0_23 = arith.constant 0 : index
    %56 = vector.load %arg4[%55, %c0_22, %c0_23] : memref<3x96x160xbf16, #tpu.memory_space<vmem>>, vector<1x96x160xbf16>
    %57 = vector.shape_cast %56 : vector<1x96x160xbf16> to vector<96x160xbf16>
    %58 = arith.index_cast %c1_i32 : i32 to index
    %c0_24 = arith.constant 0 : index
    %c0_25 = arith.constant 0 : index
    %59 = vector.load %arg5[%58, %c0_24, %c0_25] : memref<3x1x160xf32, #tpu.memory_space<vmem>>, vector<1x1x160xf32>
    %60 = vector.shape_cast %59 : vector<1x1x160xf32> to vector<1x160xf32>
    %61 = arith.index_cast %c1_i32 : i32 to index
    %c0_26 = arith.constant 0 : index
    %c0_27 = arith.constant 0 : index
    %62 = vector.load %arg6[%61, %c0_26, %c0_27] : memref<3x64x32xbf16, #tpu.memory_space<vmem>>, vector<1x64x32xbf16>
    %63 = vector.shape_cast %62 : vector<1x64x32xbf16> to vector<64x32xbf16>
    %64 = arith.index_cast %c1_i32 : i32 to index
    %c0_28 = arith.constant 0 : index
    %c0_29 = arith.constant 0 : index
    %65 = vector.load %arg7[%64, %c0_28, %c0_29] : memref<3x1x32xf32, #tpu.memory_space<vmem>>, vector<1x1x32xf32>
    %66 = vector.shape_cast %65 : vector<1x1x32xf32> to vector<1x32xf32>
    %67 = arith.truncf %54 : vector<16x32xf32> to vector<16x32xbf16>
    %cst_30 = arith.constant dense<0.000000e+00> : vector<48x32xf32>
    %68 = tpu.matmul %13, %67, %cst_30 {dimension_numbers = #tpu.dot_dimension_numbers<[1], [0], [0], [1], [0, 0, 1, 1], [], []>} : vector<48x16xbf16>, vector<16x32xbf16>, vector<48x32xf32> -> vector<48x32xf32>
    %69 = vector.extract_strided_slice %68 {offsets = [0, 0], sizes = [24, 32], strides = [1, 1]} : vector<48x32xf32> to vector<24x32xf32>
    %70 = vector.extract_strided_slice %68 {offsets = [24, 0], sizes = [24, 32], strides = [1, 1]} : vector<48x32xf32> to vector<24x32xf32>
    %71 = tpu.concatenate %69, %43, %70 in 1 : vector<24x32xf32>, vector<24x32xf32>, vector<24x32xf32> -> vector<24x96xf32>
    %72 = arith.truncf %71 : vector<24x96xf32> to vector<24x96xbf16>
    %cst_31 = arith.constant dense<0.000000e+00> : vector<24x160xf32>
    %73 = tpu.matmul %72, %57, %cst_31 {dimension_numbers = #tpu.dot_dimension_numbers<[1], [0], [0], [1], [0, 0, 1, 1], [], []>} : vector<24x96xbf16>, vector<96x160xbf16>, vector<24x160xf32> -> vector<24x160xf32>
    %74 = vector.broadcast %60 : vector<1x160xf32> to vector<24x160xf32>
    %75 = arith.addf %73, %74 : vector<24x160xf32>
    %76 = vector.extract_strided_slice %75 {offsets = [0, 128], sizes = [24, 32], strides = [1, 1]} : vector<24x160xf32> to vector<24x32xf32>
    %77 = vector.extract_strided_slice %75 {offsets = [0, 0], sizes = [24, 64], strides = [1, 1]} : vector<24x160xf32> to vector<24x64xf32>
    %78 = vector.extract_strided_slice %75 {offsets = [0, 64], sizes = [24, 64], strides = [1, 1]} : vector<24x160xf32> to vector<24x64xf32>
    %79 = tpu.concatenate %77, %78 in 0 : vector<24x64xf32>, vector<24x64xf32> -> vector<48x64xf32>
    %80 = arith.truncf %79 : vector<48x64xf32> to vector<48x64xbf16>
    %cst_32 = arith.constant dense<0.000000e+00> : vector<16x64xf32>
    %81 = tpu.matmul %13, %80, %cst_32 {dimension_numbers = #tpu.dot_dimension_numbers<[0], [0], [1], [1], [0, 1, 1, 1], [], []>} : vector<48x16xbf16>, vector<48x64xbf16>, vector<16x64xf32> -> vector<16x64xf32>
    %82 = vector.broadcast %19 : vector<16x1xf32> to vector<16x64xf32>
    %83 = arith.mulf %81, %82 : vector<16x64xf32>
    %84 = arith.truncf %83 : vector<16x64xf32> to vector<16x64xbf16>
    %cst_33 = arith.constant dense<0.000000e+00> : vector<16x32xf32>
    %85 = tpu.matmul %84, %63, %cst_33 {dimension_numbers = #tpu.dot_dimension_numbers<[1], [0], [0], [1], [0, 0, 1, 1], [], []>} : vector<16x64xbf16>, vector<64x32xbf16>, vector<16x32xf32> -> vector<16x32xf32>
    %86 = vector.broadcast %66 : vector<1x32xf32> to vector<16x32xf32>
    %87 = arith.addf %85, %86 : vector<16x32xf32>
    %c2_i32 = arith.constant 2 : i32
    %88 = arith.index_cast %c2_i32 : i32 to index
    %c0_34 = arith.constant 0 : index
    %c0_35 = arith.constant 0 : index
    %89 = vector.load %arg4[%88, %c0_34, %c0_35] : memref<3x96x160xbf16, #tpu.memory_space<vmem>>, vector<1x96x160xbf16>
    %90 = vector.shape_cast %89 : vector<1x96x160xbf16> to vector<96x160xbf16>
    %91 = arith.index_cast %c2_i32 : i32 to index
    %c0_36 = arith.constant 0 : index
    %c0_37 = arith.constant 0 : index
    %92 = vector.load %arg5[%91, %c0_36, %c0_37] : memref<3x1x160xf32, #tpu.memory_space<vmem>>, vector<1x1x160xf32>
    %93 = vector.shape_cast %92 : vector<1x1x160xf32> to vector<1x160xf32>
    %94 = arith.index_cast %c2_i32 : i32 to index
    %c0_38 = arith.constant 0 : index
    %c0_39 = arith.constant 0 : index
    %95 = vector.load %arg6[%94, %c0_38, %c0_39] : memref<3x64x32xbf16, #tpu.memory_space<vmem>>, vector<1x64x32xbf16>
    %96 = vector.shape_cast %95 : vector<1x64x32xbf16> to vector<64x32xbf16>
    %97 = arith.index_cast %c2_i32 : i32 to index
    %c0_40 = arith.constant 0 : index
    %c0_41 = arith.constant 0 : index
    %98 = vector.load %arg7[%97, %c0_40, %c0_41] : memref<3x1x32xf32, #tpu.memory_space<vmem>>, vector<1x1x32xf32>
    %99 = vector.shape_cast %98 : vector<1x1x32xf32> to vector<1x32xf32>
    %100 = arith.truncf %87 : vector<16x32xf32> to vector<16x32xbf16>
    %cst_42 = arith.constant dense<0.000000e+00> : vector<48x32xf32>
    %101 = tpu.matmul %13, %100, %cst_42 {dimension_numbers = #tpu.dot_dimension_numbers<[1], [0], [0], [1], [0, 0, 1, 1], [], []>} : vector<48x16xbf16>, vector<16x32xbf16>, vector<48x32xf32> -> vector<48x32xf32>
    %102 = vector.extract_strided_slice %101 {offsets = [0, 0], sizes = [24, 32], strides = [1, 1]} : vector<48x32xf32> to vector<24x32xf32>
    %103 = vector.extract_strided_slice %101 {offsets = [24, 0], sizes = [24, 32], strides = [1, 1]} : vector<48x32xf32> to vector<24x32xf32>
    %104 = tpu.concatenate %102, %76, %103 in 1 : vector<24x32xf32>, vector<24x32xf32>, vector<24x32xf32> -> vector<24x96xf32>
    %105 = arith.truncf %104 : vector<24x96xf32> to vector<24x96xbf16>
    %cst_43 = arith.constant dense<0.000000e+00> : vector<24x160xf32>
    %106 = tpu.matmul %105, %90, %cst_43 {dimension_numbers = #tpu.dot_dimension_numbers<[1], [0], [0], [1], [0, 0, 1, 1], [], []>} : vector<24x96xbf16>, vector<96x160xbf16>, vector<24x160xf32> -> vector<24x160xf32>
    %107 = vector.broadcast %93 : vector<1x160xf32> to vector<24x160xf32>
    %108 = arith.addf %106, %107 : vector<24x160xf32>
    %109 = vector.extract_strided_slice %108 {offsets = [0, 128], sizes = [24, 32], strides = [1, 1]} : vector<24x160xf32> to vector<24x32xf32>
    %110 = vector.extract_strided_slice %108 {offsets = [0, 0], sizes = [24, 64], strides = [1, 1]} : vector<24x160xf32> to vector<24x64xf32>
    %111 = vector.extract_strided_slice %108 {offsets = [0, 64], sizes = [24, 64], strides = [1, 1]} : vector<24x160xf32> to vector<24x64xf32>
    %112 = tpu.concatenate %110, %111 in 0 : vector<24x64xf32>, vector<24x64xf32> -> vector<48x64xf32>
    %113 = arith.truncf %112 : vector<48x64xf32> to vector<48x64xbf16>
    %cst_44 = arith.constant dense<0.000000e+00> : vector<16x64xf32>
    %114 = tpu.matmul %13, %113, %cst_44 {dimension_numbers = #tpu.dot_dimension_numbers<[0], [0], [1], [1], [0, 1, 1, 1], [], []>} : vector<48x16xbf16>, vector<48x64xbf16>, vector<16x64xf32> -> vector<16x64xf32>
    %115 = vector.broadcast %19 : vector<16x1xf32> to vector<16x64xf32>
    %116 = arith.mulf %114, %115 : vector<16x64xf32>
    %117 = arith.truncf %116 : vector<16x64xf32> to vector<16x64xbf16>
    %cst_45 = arith.constant dense<0.000000e+00> : vector<16x32xf32>
    %118 = tpu.matmul %117, %96, %cst_45 {dimension_numbers = #tpu.dot_dimension_numbers<[1], [0], [0], [1], [0, 0, 1, 1], [], []>} : vector<16x64xbf16>, vector<64x32xbf16>, vector<16x32xf32> -> vector<16x32xf32>
    %119 = vector.broadcast %99 : vector<1x32xf32> to vector<16x32xf32>
    %120 = arith.addf %118, %119 : vector<16x32xf32>
    %c3_i32 = arith.constant 3 : i32
    %c0_46 = arith.constant 0 : index
    %c0_47 = arith.constant 0 : index
    %121 = vector.load %arg8[%c0_46, %c0_47] : memref<16x32xf32, #tpu.memory_space<vmem>>, vector<16x32xf32>
    tpu.vector_store %arg8[%c0_46, %c0_47], %120 {strides = array<i32>} : memref<16x32xf32, #tpu.memory_space<vmem>>, vector<16x32xf32>,
    %c0_48 = arith.constant 0 : index
    %c0_49 = arith.constant 0 : index
    %122 = vector.load %arg9[%c0_48, %c0_49] : memref<24x32xf32, #tpu.memory_space<vmem>>, vector<24x32xf32>
    tpu.vector_store %arg9[%c0_48, %c0_49], %109 {strides = array<i32>} : memref<24x32xf32, #tpu.memory_space<vmem>>, vector<24x32xf32>,
    return
  }
}

</mosaic_0001>

<bundles_post_ra>
// kernel: graph_triple_conv_net_prev.1
= control target key start
LH: loop header
LB: loop body
LE: loop exit
PB: predicated region body
PF: predicated region fallthrough
CT: control target
= control target key end

     0   :  { %15 = vsyncpa [#allocation3], 0  ;;  %v1470_v2 = vmov 0   ;;  %s1962_s0 = inlined_call_operand.vmem [shape: f32[16,32], index: 0, kind: input, shape index: {}]   ;;  %s1963_s1 = inlined_call_operand.vmem [shape: f32[24,32], index: 1, kind: input, shape index: {}]   ;;  %s1964_s2 = inlined_call_operand.vmem [shape: s32[24,1], index: 2, kind: input, shape index: {}]   ;;  %s1965_s3 = inlined_call_operand.vmem [shape: s32[24,1], index: 3, kind: input, shape index: {}]   ;;  %s1966_s4 = inlined_call_operand.vmem [shape: bf16[3,96,160], index: 4, kind: input, shape index: {}]   ;;  %s1967_s5 = inlined_call_operand.vmem [shape: f32[3,1,160], index: 5, kind: input, shape index: {}]   ;;  %s1968_s6 = inlined_call_operand.vmem [shape: bf16[3,64,32], index: 6, kind: input, shape index: {}]   ;;  %s1969_s7 = inlined_call_operand.vmem [shape: f32[3,1,32], index: 7, kind: input, shape index: {}]   ;;  %s1970_s8 = inlined_call_operand.hbm [shape: f32[16,32], index: 8, kind: output, shape index: {0}]   ;;  %s1971_s9 = inlined_call_operand.hbm [shape: f32[24,32], index: 9, kind: output, shape index: {1}]  }
   0x1   :  { %v37_v0 = vld [vmem:[%s1964_s2] sm:$0xff]  ;;  %v39_v1 = vld [vmem:[%s1964_s2 + $0x10] sm:$0xff]  ;;  %1363 = vset.pattern.permute.xlu0 %v1470_v2  ;;  %1364 = vset.pattern.permute.xlu1 %v1470_v2  ;;  %v62_v3 = vld [vmem:[%s1965_s3 + $0x8] sm:$0xff] }
   0x2   :  { %41 = vperm.xlu0 %1363, %v37_v0   ;;  %47 = vperm.xlu1 %1364, %v39_v1  }
   0x3   :  { %1365 = vset.pattern.permute.xlu2 %v1470_v2 }
   0x4   :  { %16 = vsyncpa [#allocation5], 0  ;;  %68 = vperm.xlu2 %1365, %v62_v3   ;;  %v38_v4 = vld [vmem:[%s1964_s2 + $0x8] sm:$0xff]  ;;  %v61_v5 = vld [vmem:[%s1965_s3] sm:$0xff]  ;;  %v35_v13 = vlaneseq  ;;  %v1472_v17 = vmov 0.0   ;;  %vm202_vm4 = vcmask 130048  }
   0x5   :  { %v63_v6 = vld [vmem:[%s1965_s3 + $0x10] sm:$0xff]  ;;  %v174_v7 = vld [vmem:[%s1962_s0] sm:$0xff]  ;;  %v175_v8 = vld [vmem:[%s1962_s0 + $0x8] sm:$0xff]  ;;  %s1471_s3 = smov 32   ;;  %vm103_vm5 = vcmask 1043456   ;;  %vm259_vm8 = vcmask 261120  }
   0x6   :  { %v201_v9 = vpack.c.bf16 %v175_v8, %v174_v7  ;;  %v176_v10 = vld [vmem:[%s1963_s1] sm:$0xff]  ;;  %v177_v11 = vld [vmem:[%s1963_s1 + $0x8] sm:$0xff]  ;;  %v36_v14 = vand.u32 127, %v35_v13  ;;  %v178_v29 = vld [vmem:[%s1963_s1 + $0x10] sm:$0xff]  ;;  %s1473_s1 = smov 64   ;;  %vm263_vm9 = vcmask 523264  }
   0x7   :  { %v1366_v12 = vpack.i.bf16 %v177_v11, %v176_v10  ;;  %v1088_v53 = vld [vmem:[%s1966_s4 + $0x50] sm:$0xf]  ;;  %v1317_v54 = vld [vmem:[%s1966_s4 + $0x54] sm:$0xf0]  ;;  %v1316_v56 = vld [vmem:[%s1966_s4 + $0x54] sm:$0xf] }
   0x8   :  { %218 = vmatpush.bf16.msra.mxu1 %v201_v9  ;;  %v1089_v55 = vor.u32 %v1317_v54, %v1088_v53  ;;  %v1090_v57 = vld [vmem:[%s1966_s4 + $0x58] sm:$0xf0]  ;;  %v1080_v58 = vld [vmem:[%s1966_s4 + $0x40] sm:$0xf]  ;;  %v1315_v60 = vld [vmem:[%s1966_s4 + $0x44] sm:$0xf0] }
   0x9   :  { %v1093_v59 = vor.u32 %v1316_v56, %v1090_v57  ;;  %v1314_v61 = vld [vmem:[%s1966_s4 + $0x44] sm:$0xf]  ;;  %v1082_v62 = vld [vmem:[%s1966_s4 + $0x48] sm:$0xf0]  ;;  %v1081_v63 = vor.u32 %v1315_v60, %v1080_v58  ;;  %v1072_v1 = vld [vmem:[%s1966_s4 + $0x30] sm:$0xf] }
   0xa   :  { %44 = vperm.xlu0 %1363, %v38_v4   ;;  %65 = vperm.xlu1 %1364, %v61_v5   ;;  %v1085_v0 = vor.u32 %v1314_v61, %v1082_v62  ;;  %v1313_v2 = vld [vmem:[%s1966_s4 + $0x34] sm:$0xf0]  ;;  %v1312_v3 = vld [vmem:[%s1966_s4 + $0x34] sm:$0xf]  ;;  %v1074_v4 = vld [vmem:[%s1966_s4 + $0x38] sm:$0xf0] }
   0xb   :  { %343 = vmatpush.bf16.msra.mxu2 %v1089_v55  ;;  %361 = vmatpush.bf16.msra.mxu3 %v1093_v59  ;;  %v1073_v5 = vor.u32 %v1313_v2, %v1072_v1  ;;  %v1064_v7 = vld [vmem:[%s1966_s4 + $0x20] sm:$0xf]  ;;  %v1311_v8 = vld [vmem:[%s1966_s4 + $0x24] sm:$0xf0]  ;;  %v1310_v9 = vld [vmem:[%s1966_s4 + $0x24] sm:$0xf] }
   0xc   :  { %71 = vperm.xlu2 %1365, %v63_v6   ;;  %v1077_v6 = vor.u32 %v1312_v3, %v1074_v4  ;;  %v1066_v10 = vld [vmem:[%s1966_s4 + $0x28] sm:$0xf0]  ;;  %v1065_v11 = vor.u32 %v1311_v8, %v1064_v7  ;;  %v1056_v13 = vld [vmem:[%s1966_s4 + $0x10] sm:$0xf]  ;;  %vm334_vm10 = vcmask 785408   ;;  %vm124_vm11 = vcmask 392192  }
   0xd   :  { %s1475_s19 = smov [#allocation4]   ;;  %s1019_s23 = sshll.u32 %s1971_s9, 4  ;;  %s1020_s23 = int_to_ptr.hbm [resolvable:$true] %s1019_s23 }
   0xe   :  { %s1017_s20 = sshll.u32 %s1475_s19, 4  ;;  %s1476_s24 = smov 128   ;;  %s1018_s20 = int_to_ptr.vmem [resolvable:$true] %s1017_s20 }
   0xf   :  { %344 = vmatpush.bf16.msra.mxu2 %v1081_v63  ;;  %362 = vmatpush.bf16.msra.mxu3 %v1085_v0  ;;  %s1478_s26 = smov [#allocation2]   ;;  %s1006_s28 = sshll.u32 %s1970_s8, 4  ;;  %s1007_s28 = int_to_ptr.hbm [resolvable:$true] %s1006_s28 }
  0x10   :  { %s1004_s27 = sshll.u32 %s1478_s26, 4  ;;  %s1005_s27 = int_to_ptr.vmem [resolvable:$true] %s1004_s27 }
  0x12   :  { %1367 = vrot.lane.b32.xlu0 %v1366_v12, %s1471_s3  ;;  %v1069_v12 = vor.u32 %v1310_v9, %v1066_v10 }
  0x13   :  { %345 = vmatpush.bf16.msra.mxu2 %v1073_v5  ;;  %363 = vmatpush.bf16.msra.mxu3 %v1077_v6 }
  0x14   :  { %242 = vrot.lane.b32.xlu2 %v178_v29, %s1471_s3 }
  0x17   :  { %346 = vmatpush.bf16.msra.mxu2 %v1065_v11  ;;  %364 = vmatpush.bf16.msra.mxu3 %v1069_v12 }
  0x5e   :  { %v69_v32 = vpop.permute.xlu2 %68 }
  0x5f   :  { %vm74_vm6 = vcmp.eq.s32.totalorder %v69_v32, %v36_v14 }
  0x60   :  { %v1040_v39 = vsel %vm74_vm6, 1.0, %v1472_v17 }
  0x61   :  { %v83_v41 = vpack.c.bf16 %v1040_v39, %v1040_v39 }
  0x63   :  { %v98_v43 = vunpack.c.l.b16 %v83_v41 }
  0x66   :  { %v72_v37 = vpop.permute.xlu2 %71 }
  0x67   :  { %vm75_vm7 = vcmp.eq.s32.totalorder %v72_v37, %v36_v14 }
  0x68   :  { %v1041_v40 = vsel %vm75_vm7, 1.0, %v1472_v17 }
  0x69   :  { %v84_v42 = vpack.c.bf16 %v1041_v40, %v1041_v40 }
  0x6b   :  { %v99_v44 = vunpack.c.l.b16 %v84_v42 }
  0x6d   :  { %v1572_v45 = vpack.c.b16 %v99_v44, %v98_v43 }
  0x6e   :  { %v243_v39 = vpop.permute.xlu2 %242 }
  0x74   :  { %v42_v15 = vpop.permute.xlu0 %41  ;;  %v48_v16 = vpop.permute.xlu1 %47 }
  0x75   :  { %vm49_vm0 = vcmp.eq.s32.totalorder %v42_v15, %v36_v14  ;;  %vm51_vm2 = vcmp.eq.s32.totalorder %v48_v16, %v36_v14  ;;  %v1308_v15 = vld [vmem:[%s1966_s4 + $0x14] sm:$0xf]  ;;  %v1058_v16 = vld [vmem:[%s1966_s4 + $0x18] sm:$0xf0] }
  0x76   :  { %v1036_v18 = vsel %vm49_vm0, 1.0, %v1472_v17  ;;  %v1038_v27 = vsel %vm51_vm2, 1.0, %v1472_v17 }
  0x77   :  { %v58_v20 = vpack.c.bf16 %v1036_v18, %v1036_v18  ;;  %v60_v30 = vpack.c.bf16 %v1038_v27, %v1038_v27  ;;  %v1061_v18 = vor.u32 %v1308_v15, %v1058_v16 }
  0x79   :  { %v88_v24 = vunpack.c.l.b16 %v58_v20  ;;  %v90_v33 = vunpack.c.l.b16 %v60_v30  ;;  %365 = vmatpush.bf16.msra.mxu3 %v1061_v18  ;;  %v1307_v20 = vld [vmem:[%s1966_s4 + $0x4] sm:$0xf0] }
  0x7b   :  { %v92_v35 = vpack.c.b16 %v90_v33, %v90_v33 }
  0x7c   :  { %v45_v19 = vpop.permute.xlu0 %44  ;;  %v66_v23 = vpop.permute.xlu1 %65 }
  0x7d   :  { %vm50_vm1 = vcmp.eq.s32.totalorder %v45_v19, %v36_v14  ;;  %vm73_vm3 = vcmp.eq.s32.totalorder %v66_v23, %v36_v14  ;;  %v1309_v14 = vld [vmem:[%s1966_s4 + $0x14] sm:$0xf0]  ;;  %v1048_v19 = vld [vmem:[%s1966_s4] sm:$0xf]  ;;  %v1050_v23 = vld [vmem:[%s1966_s4 + $0x8] sm:$0xf0] }
  0x7e   :  { %v1037_v21 = vsel %vm50_vm1, 1.0, %v1472_v17  ;;  %v1039_v28 = vsel %vm73_vm3, 1.0, %v1472_v17  ;;  %v1057_v17 = vor.u32 %v1309_v14, %v1056_v13 }
  0x7f   :  { %v59_v22 = vpack.c.bf16 %v1037_v21, %v1037_v21  ;;  %v82_v31 = vpack.c.bf16 %v1039_v28, %v1039_v28  ;;  %v1306_v21 = vld [vmem:[%s1966_s4 + $0x4] sm:$0xf] }
  0x80   :  { %347 = vmatpush.bf16.msra.mxu2 %v1057_v17 }
  0x81   :  { %v89_v25 = vunpack.c.l.b16 %v59_v22  ;;  %v97_v34 = vunpack.c.l.b16 %v82_v31  ;;  %v1049_v22 = vor.u32 %v1307_v20, %v1048_v19 }
  0x83   :  { %v1560_v26 = vpack.c.b16 %v89_v25, %v88_v24  ;;  %v100_v36 = vpack.c.b16 %v97_v34, %v97_v34  ;;  %v1053_v24 = vor.u32 %v1306_v21, %v1050_v23  ;;  %v1474_v25 = vmov 1065369472  }
  0x84   :  { %348 = vmatpush.bf16.msra.mxu2 %v1049_v22  ;;  %133 = vmatpush.bf16.msra.mxu0 %v1474_v25  ;;  %v1368_v27 = vpop.permute.xlu0 %1367 }
  0x85   :  { %1043 = vmatmul.msk.bf16.vlgmr.msra.gmra.mxu1 %vm202_vm4, %v1560_v26  ;;  %v1568_v38 = vsel %vm103_vm5, %v92_v35, %v100_v36  ;;  %366 = vmatpush.bf16.msra.mxu3 %v1053_v24  ;;  %v1370_v28 = vunpack.i.h.bf16 %v1368_v27  ;;  %v1369_v29 = vunpack.i.l.bf16 %v1368_v27 }
  0x88   :  { %134 = vmatpush.bf16.msra.mxu0 %v1474_v25 }
  0x8c   :  { %135 = vmatpush.bf16.msra.mxu0 %v1474_v25 }
  0x95   :  { %1044 = vmatmul.msk.bf16.gmra.mxu1 %vm202_vm4, %v1568_v38 }
  0xa5   :  { %1045 = vmatmul.msk.bf16.gmra.mxu1 %vm202_vm4, %v1572_v45 }
 0x102   :  { %v1576_v46 = vpop.f32.mrf.mxu1 }
 0x103   :  { %v260_v33 = vsel %vm259_vm8, %v1576_v46, %v1369_v29  ;;  %v191_v46 = vld [vmem:[%s1967_s5] sm:$0x3] }
 0x10a   :  { %v1578_v47 = vpop.f32.mrf.mxu1 }
 0x10b   :  { %v261_v34 = vsel %vm259_vm8, %v1578_v47, %v1370_v28  ;;  %v270_v47 = vperm.slane %v191_v46, 0 }
 0x112   :  { %v1580_v48 = vpop.f32.mrf.mxu1 }
 0x113   :  { %v262_v41 = vsel %vm259_vm8, %v1580_v48, %v243_v39 }
 0x11a   :  { %v227_v49 = vpop.f32.mrf.mxu1 }
 0x122   :  { %v230_v50 = vpop.f32.mrf.mxu1 }
 0x123   :  { %v1371_v51 = vpack.i.bf16 %v230_v50, %v227_v49  ;;  %v271_v49 = vperm.slane %v191_v46, 1 }
 0x125   :  { %1372 = vrot.lane.b32.xlu1 %v1371_v51, %s1473_s1 }
 0x12a   :  { %v232_v52 = vpop.f32.mrf.mxu1 }
 0x12b   :  { %254 = vrot.lane.b32.xlu0 %v232_v52, %s1473_s1 }
 0x15a   :  { %108 = vxpose.xlu1.c.b16.start [1/3] (short) (narrow) %v1560_v26, 16 }
 0x16a   :  { %109 = vxpose.xlu1.c.b16.cont [2/3] (short) (narrow) %v1568_v38, 16 }
 0x17a   :  { %110 = vxpose.xlu1.c.b16.end [3/3] (short) (narrow) %v1572_v45, 16 }
 0x197   :  { %v1373_v30 = vpop.permute.xlu1 %1372 }
 0x198   :  { %v1375_v31 = vunpack.i.h.bf16 %v1373_v30  ;;  %v1374_v32 = vunpack.i.l.bf16 %v1373_v30 }
 0x19a   :  { %v264_v35 = vsel %vm263_vm9, %v260_v33, %v1374_v32  ;;  %v265_v36 = vsel %vm263_vm9, %v261_v34, %v1375_v31  ;;  %v1321_v33 = vld [vmem:[%s1968_s6 + $0x18] sm:$0xff]  ;;  %v1320_v34 = vld [vmem:[%s1968_s6 + $0x10] sm:$0xff] }
 0x19b   :  { %v267_v37 = vpack.c.bf16 %v265_v36, %v264_v35  ;;  %v1319_v35 = vld [vmem:[%s1968_s6 + $0x8] sm:$0xff]  ;;  %v1318_v36 = vld [vmem:[%s1968_s6] sm:$0xff] }
 0x19d   :  { %1094 = vmatmul.msk.bf16.vlgmr.msra.gmra.mxu2 %vm334_vm10, %v267_v37  ;;  %1096 = vmatmul.msk.bf16.vlgmr.msra.gmra.mxu3 %vm334_vm10, %v267_v37  ;;  %v255_v40 = vpop.permute.xlu0 %254 }
 0x19e   :  { %v266_v42 = vsel %vm263_vm9, %v262_v41, %v255_v40 }
 0x19f   :  { %v268_v43 = vpack.c.bf16 %v266_v42, %v266_v42 }
 0x1ad   :  { %1095 = vmatmul.msk.bf16.gmra.mxu2 %vm334_vm10, %v268_v43  ;;  %1097 = vmatmul.msk.bf16.gmra.mxu3 %vm334_vm10, %v268_v43 }
 0x206   :  { %v1672_v44 = vpop.trf.xlu1 }
 0x207   :  { %1042 = vmatmul.msk.bf16.vlgmr.msra.gmra.mxu0 %vm124_vm11, %v1672_v44 }
 0x220   :  { %v350_v48 = vpop.f32.mrf.mxu2  ;;  %v368_v50 = vpop.f32.mrf.mxu3 }
 0x221   :  { %v351_v51 = vadd.f32 %v350_v48, %v270_v47  ;;  %v369_v52 = vadd.f32 %v368_v50, %v271_v49 }
 0x223   :  { %380 = vrot.lane.b32.xlu0 %v351_v51, %s1473_s1 }
 0x228   :  { %v352_v53 = vpop.f32.mrf.mxu2  ;;  %v370_v54 = vpop.f32.mrf.mxu3 }
 0x229   :  { %v353_v55 = vadd.f32 %v352_v53, %v270_v47  ;;  %v371_v56 = vadd.f32 %v370_v54, %v271_v49 }
 0x22b   :  { %v1381_v57 = vpack.i.bf16 %v371_v56, %v369_v52  ;;  %v389_v58 = vpack.c.bf16 %v353_v55, %v351_v51  ;;  %v1333_v56 = vld [vmem:[%s1966_s4 + $0xb4] sm:$0xf0] }
 0x230   :  { %v355_v59 = vpop.f32.mrf.mxu2  ;;  %v373_v60 = vpop.f32.mrf.mxu3 }
 0x231   :  { %v356_v61 = vadd.f32 %v355_v59, %v270_v47  ;;  %v374_v62 = vadd.f32 %v373_v60, %v271_v49  ;;  %v1411_v49 = vld [vmem:[%s1969_s7] ss:$0 sm:$0xff]  ;;  %v1185_v59 = vld [vmem:[%s1966_s4 + $0xb8] sm:$0xf0] }
 0x232   :  { %v1175_v60 = vld [vmem:[%s1966_s4 + $0xa0] sm:$0xf] }
 0x233   :  { %v1376_v63 = vpack.i.bf16 %v356_v61, %v353_v55  ;;  %v1183_v55 = vld [vmem:[%s1966_s4 + $0xb0] sm:$0xf] }
 0x235   :  { %1377 = vrot.lane.b32.xlu2 %v1376_v63, %s1473_s1  ;;  %v1330_v63 = vld [vmem:[%s1966_s4 + $0xa4] sm:$0xf] }
 0x238   :  { %v357_v0 = vpop.f32.mrf.mxu2  ;;  %v375_v1 = vpop.f32.mrf.mxu3 }
 0x239   :  { %v1177_v0 = vld [vmem:[%s1966_s4 + $0xa8] sm:$0xf0] }
 0x284   :  { %v137_v2 = vpop.f32.mrf.mxu0 }
 0x285   :  { %v142_v3 = vmax.f32 %v137_v2, 1.0  ;;  %v1180_v2 = vor.u32 %v1330_v63, %v1177_v0 }
 0x287   :  { %1414 = vrcp.f32 %v142_v3  ;;  %vm149_vm12 = vweird.f32 %v142_v3  ;;  %v153_v9 = vand.u32 2147483647, %v142_v3  ;;  %v155_v10 = vand.u32 2147483648, %v142_v3 }
 0x289   :  { %v156_v16 = vor.u32 1.1754944e-38, %v155_v10  ;;  %vm154_vm15 = vcmp.eq.f32.partialorder %v153_v9, 8.507059e+37  ;;  %v1159_v10 = vld [vmem:[%s1966_s4 + $0x80] sm:$0xf] }
 0x28c   :  { %v139_v4 = vpop.f32.mrf.mxu0 }
 0x28d   :  { %v1415_v5 = vpop.eup %1414  ;;  %v143_v6 = vmax.f32 %v139_v4, 1.0  ;;  %v1329_v4 = vld [vmem:[%s1966_s4 + $0x94] sm:$0xf0] }
 0x28e   :  { %v145_v7 = vmul.f32 %v1415_v5, %v142_v3  ;;  %vm150_vm13 = vweird.f32 %v1415_v5  ;;  %v1167_v3 = vld [vmem:[%s1966_s4 + $0x90] sm:$0xf] }
 0x28f   :  { %1416 = vrcp.f32 %v143_v6  ;;  %v1378_v8 = vpop.permute.xlu2 %1377  ;;  %vm151_vm14 = vmor %vm149_vm12, %vm150_vm13  ;;  %v170_v25 = vand.u32 2147483648, %v143_v6  ;;  %vm164_vm0 = vweird.f32 %v143_v6  ;;  %v168_v28 = vand.u32 2147483647, %v143_v6 }
 0x290   :  { %v1380_v11 = vunpack.i.h.bf16 %v1378_v8  ;;  %v1379_v12 = vunpack.i.l.bf16 %v1378_v8  ;;  %v146_v13 = vsub.f32 1.0, %v145_v7  ;;  %v1169_v7 = vld [vmem:[%s1966_s4 + $0x98] sm:$0xf0]  ;;  %v1168_v8 = vor.u32 %v1329_v4, %v1167_v3 }
 0x291   :  { %v171_v30 = vor.u32 1.1754944e-38, %v170_v25  ;;  %vm169_vm3 = vcmp.eq.f32.partialorder %v168_v28, 8.507059e+37  ;;  %v1323_v28 = vld [vmem:[%s1966_s4 + $0x64] sm:$0xf0] }
 0x292   :  { %v391_v14 = vpack.c.bf16 %v1380_v11, %v1379_v12  ;;  %v147_v15 = vmul.f32 %v1415_v5, %v146_v13  ;;  %v1327_v11 = vld [vmem:[%s1966_s4 + $0x84] sm:$0xf0]  ;;  %v1326_v12 = vld [vmem:[%s1966_s4 + $0x84] sm:$0xf]  ;;  %v1161_v13 = vld [vmem:[%s1966_s4 + $0x88] sm:$0xf0] }
 0x294   :  { %397 = vmatpush.bf16.msrb.mxu0 %v391_v14  ;;  %v148_v17 = vadd.f32 %v1415_v5, %v147_v15  ;;  %v1160_v14 = vor.u32 %v1327_v11, %v1159_v10  ;;  %v1164_v15 = vor.u32 %v1326_v12, %v1161_v13 }
 0x295   :  { %v1417_v18 = vpop.eup %1416  ;;  %v381_v19 = vpop.permute.xlu0 %380 }
 0x296   :  { %v390_v20 = vpack.c.bf16 %v381_v19, %v356_v61  ;;  %v152_v21 = vsel %vm151_vm14, %v1415_v5, %v148_v17  ;;  %v160_v22 = vmul.f32 %v1417_v18, %v143_v6  ;;  %vm165_vm1 = vweird.f32 %v1417_v18  ;;  %v1331_v61 = vld [vmem:[%s1966_s4 + $0xa4] sm:$0xf0]  ;;  %v1328_v6 = vld [vmem:[%s1966_s4 + $0x94] sm:$0xf]  ;;  %v1325_v17 = vld [vmem:[%s1966_s4 + $0x74] sm:$0xf0] }
 0x297   :  { %v157_v23 = vsel %vm154_vm15, %v156_v16, %v152_v21  ;;  %vm166_vm2 = vmor %vm164_vm0, %vm165_vm1  ;;  %v1176_v1 = vor.u32 %v1331_v61, %v1175_v60  ;;  %v1172_v9 = vor.u32 %v1328_v6, %v1169_v7  ;;  %v1151_v16 = vld [vmem:[%s1966_s4 + $0x70] sm:$0xf]  ;;  %v1324_v19 = vld [vmem:[%s1966_s4 + $0x74] sm:$0xf] }
 0x298   :  { %408 = vperm.xlu2 %1365, %v157_v23   ;;  %398 = vmatpush.bf16.msrb.mxu0 %v390_v20  ;;  %v161_v24 = vsub.f32 1.0, %v160_v22  ;;  %v1153_v20 = vld [vmem:[%s1966_s4 + $0x78] sm:$0xf0]  ;;  %v1152_v21 = vor.u32 %v1325_v17, %v1151_v16  ;;  %v1336_v17 = vld [vmem:[%s1968_s6 + $0x30] sm:$0xff] }
 0x299   :  { %v1156_v22 = vor.u32 %v1324_v19, %v1153_v20  ;;  %v1337_v16 = vld [vmem:[%s1968_s6 + $0x38] sm:$0xff]  ;;  %v1334_v19 = vld [vmem:[%s1968_s6 + $0x20] sm:$0xff] }
 0x29a   :  { %v162_v27 = vmul.f32 %v1417_v18, %v161_v24 }
 0x29c   :  { %399 = vmatpush.bf16.msrb.mxu0 %v389_v58  ;;  %v163_v29 = vadd.f32 %v1417_v18, %v162_v27  ;;  %v1184_v58 = vor.u32 %v1333_v56, %v1183_v55  ;;  %v1143_v27 = vld [vmem:[%s1966_s4 + $0x60] sm:$0xf] }
 0x29e   :  { %v167_v31 = vsel %vm166_vm2, %v1417_v18, %v163_v29  ;;  %619 = vmatpush.bf16.msrb.mxu2 %v1184_v58  ;;  %v1322_v29 = vld [vmem:[%s1966_s4 + $0x64] sm:$0xf] }
 0x29f   :  { %1098 = vmatmul.msk.bf16.vlgmr.msrb.gmra.mxu0 %vm124_vm11, %v1672_v44  ;;  %v172_v32 = vsel %vm169_vm3, %v171_v30, %v167_v31  ;;  %v1144_v30 = vor.u32 %v1323_v28, %v1143_v27  ;;  %v1145_v31 = vld [vmem:[%s1966_s4 + $0x68] sm:$0xf0]  ;;  %v1412_v27 = vld [vmem:[%s1969_s7 + $0x1] ss:$0 sm:$0xff] }
 0x2a0   :  { %413 = vperm.xlu0 %1363, %v172_v32   ;;  %1382 = vrot.lane.b32.xlu2 %v1381_v57, %s1471_s3  ;;  %v1332_v57 = vld [vmem:[%s1966_s4 + $0xb4] sm:$0xf]  ;;  %v1148_v32 = vor.u32 %v1322_v29, %v1145_v31 }
 0x2a1   :  { %453 = vmatpush.bf16.msra.mxu0 %v1321_v33 }
 0x2a2   :  { %620 = vmatpush.bf16.msrb.mxu2 %v1176_v1 }
 0x2a5   :  { %454 = vmatpush.bf16.msra.mxu0 %v1320_v34 }
 0x2a6   :  { %621 = vmatpush.bf16.msrb.mxu2 %v1168_v8 }
 0x2a8   :  { %521 = vrot.lane.b32.xlu2 %v374_v62, %s1471_s3  ;;  %v1188_v62 = vor.u32 %v1332_v57, %v1185_v59 }
 0x2a9   :  { %455 = vmatpush.bf16.msra.mxu0 %v1319_v35 }
 0x2aa   :  { %637 = vmatpush.bf16.msrb.mxu3 %v1188_v62  ;;  %622 = vmatpush.bf16.msrb.mxu2 %v1160_v14 }
 0x2ad   :  { %456 = vmatpush.bf16.msra.mxu0 %v1318_v36 }
 0x2ae   :  { %638 = vmatpush.bf16.msrb.mxu3 %v1180_v2  ;;  %623 = vmatpush.bf16.msrb.mxu2 %v1152_v21 }
 0x2b2   :  { %639 = vmatpush.bf16.msrb.mxu3 %v1172_v9  ;;  %624 = vmatpush.bf16.msrb.mxu2 %v1144_v30 }
 0x2b6   :  { %640 = vmatpush.bf16.msrb.mxu3 %v1164_v15 }
 0x2ba   :  { %641 = vmatpush.bf16.msrb.mxu3 %v1156_v22 }
 0x2be   :  { %642 = vmatpush.bf16.msrb.mxu3 %v1148_v32 }
 0x2f2   :  { %v1697_v39 = vpop.permute.xlu2 %408 }
 0x2fa   :  { %v1383_v33 = vpop.permute.xlu2 %1382 }
 0x2fb   :  { %v1385_v34 = vunpack.i.h.bf16 %v1383_v33  ;;  %v1384_v35 = vunpack.i.l.bf16 %v1383_v33 }
 0x312   :  { %v1699_v40 = vpop.permute.xlu0 %413 }
 0x31c   :  { %v401_v37 = vpop.f32.mrf.mxu0 }
 0x31d   :  { %v416_v42 = vmul.f32 %v1697_v39, %v401_v37 }
 0x324   :  { %v403_v41 = vpop.f32.mrf.mxu0 }
 0x325   :  { %v417_v43 = vmul.f32 %v1699_v40, %v403_v41 }
 0x327   :  { %v418_v46 = vpack.c.bf16 %v417_v43, %v416_v42 }
 0x329   :  { %1115 = vmatmul.msk.bf16.vlgmr.msra.gmra.mxu0 %vm263_vm9, %v418_v46 }
 0x3a6   :  { %v458_v47 = vpop.f32.mrf.mxu0 }
 0x3a7   :  { %v459_v50 = vadd.f32 %v1411_v49, %v458_v47 }
 0x3ae   :  { %v460_v48 = vpop.f32.mrf.mxu0 }
 0x3af   :  { %v461_v51 = vadd.f32 %v1411_v49, %v460_v48 }
 0x3b1   :  { %v489_v52 = vpack.c.bf16 %v461_v51, %v459_v50  ;;  %v522_v50 = vpop.permute.xlu2 %521 }
 0x3b3   :  { %497 = vmatpush.bf16.msrb.mxu1 %v489_v52 }
 0x3b6   :  { %1138 = vmatmul.msk.bf16.vlgmr.msrb.gmra.mxu1 %vm202_vm4, %v1560_v26 }
 0x3c6   :  { %1139 = vmatmul.msk.bf16.gmra.mxu1 %vm202_vm4, %v1568_v38 }
 0x3d6   :  { %1140 = vmatmul.msk.bf16.gmra.mxu1 %vm202_vm4, %v1572_v45 }
 0x433   :  { %v1713_v53 = vpop.f32.mrf.mxu1 }
 0x434   :  { %v538_v42 = vsel %vm259_vm8, %v1713_v53, %v1384_v35  ;;  %v1128_v53 = vld [vmem:[%s1967_s5 + $0x2] sm:$0x3]  ;;  %v1349_v35 = vld [vmem:[%s1966_s4 + $0x114] sm:$0xf0] }
 0x435   :  { %v548_v3 = vperm.slane %v1128_v53, 1 }
 0x43b   :  { %v1715_v54 = vpop.f32.mrf.mxu1 }
 0x43c   :  { %v539_v43 = vsel %vm259_vm8, %v1715_v54, %v1385_v34  ;;  %v547_v54 = vperm.slane %v1128_v53, 0  ;;  %v1278_v34 = vld [vmem:[%s1966_s4 + $0x110] sm:$0xf] }
 0x443   :  { %v504_v5 = vpop.f32.mrf.mxu1 }
 0x444   :  { %v540_v51 = vsel %vm259_vm8, %v504_v5, %v522_v50 }
 0x44b   :  { %v506_v18 = vpop.f32.mrf.mxu1 }
 0x453   :  { %v509_v23 = vpop.f32.mrf.mxu1 }
 0x454   :  { %v1386_v24 = vpack.i.bf16 %v509_v23, %v506_v18  ;;  %v1335_v18 = vld [vmem:[%s1968_s6 + $0x28] sm:$0xff] }
 0x456   :  { %1387 = vrot.lane.b32.xlu0 %v1386_v24, %s1473_s1 }
 0x45b   :  { %v511_v25 = vpop.f32.mrf.mxu1 }
 0x45e   :  { %533 = vrot.lane.b32.xlu0 %v511_v25, %s1473_s1 }
 0x4c8   :  { %v1388_v36 = vpop.permute.xlu0 %1387 }
 0x4c9   :  { %v1390_v37 = vunpack.i.h.bf16 %v1388_v36  ;;  %v1389_v41 = vunpack.i.l.bf16 %v1388_v36  ;;  %v1270_v36 = vld [vmem:[%s1966_s4 + $0x100] sm:$0xf] }
 0x4cb   :  { %v542_v46 = vsel %vm263_vm9, %v539_v43, %v1390_v37  ;;  %v541_v47 = vsel %vm263_vm9, %v538_v42, %v1389_v41  ;;  %v1347_v37 = vld [vmem:[%s1966_s4 + $0x104] sm:$0xf0]  ;;  %v1346_v42 = vld [vmem:[%s1966_s4 + $0x104] sm:$0xf]  ;;  %v1272_v43 = vld [vmem:[%s1966_s4 + $0x108] sm:$0xf0] }
 0x4cc   :  { %v544_v49 = vpack.c.bf16 %v542_v46, %v541_v47  ;;  %v1271_v46 = vor.u32 %v1347_v37, %v1270_v36  ;;  %v1275_v47 = vor.u32 %v1346_v42, %v1272_v43 }
 0x4ce   :  { %1189 = vmatmul.msk.bf16.vlgmr.msrb.gmra.mxu2 %vm334_vm10, %v544_v49  ;;  %1191 = vmatmul.msk.bf16.vlgmr.msrb.gmra.mxu3 %vm334_vm10, %v544_v49  ;;  %v1262_v49 = vld [vmem:[%s1966_s4 + $0xf0] sm:$0xf] }
 0x4d0   :  { %v534_v48 = vpop.permute.xlu0 %533 }
 0x4d1   :  { %v543_v52 = vsel %vm263_vm9, %v540_v51, %v534_v48  ;;  %v1345_v48 = vld [vmem:[%s1966_s4 + $0xf4] sm:$0xf0]  ;;  %v1344_v51 = vld [vmem:[%s1966_s4 + $0xf4] sm:$0xf] }
 0x4d2   :  { %v545_v55 = vpack.c.bf16 %v543_v52, %v543_v52  ;;  %v1264_v52 = vld [vmem:[%s1966_s4 + $0xf8] sm:$0xf0] }
 0x4d3   :  { %v1267_v53 = vor.u32 %v1344_v51, %v1264_v52 }
 0x4de   :  { %1190 = vmatmul.msk.bf16.gmra.mxu2 %vm334_vm10, %v545_v55  ;;  %1192 = vmatmul.msk.bf16.gmra.mxu3 %vm334_vm10, %v545_v55  ;;  %v1263_v55 = vor.u32 %v1345_v48, %v1262_v49 }
 0x551   :  { %v626_v56 = vpop.f32.mrf.mxu2  ;;  %v644_v57 = vpop.f32.mrf.mxu3 }
 0x552   :  { %v627_v58 = vadd.f32 %v626_v56, %v547_v54  ;;  %v645_v7 = vadd.f32 %v644_v57, %v548_v3  ;;  %v1343_v56 = vld [vmem:[%s1966_s4 + $0xe4] sm:$0xf0]  ;;  %v1342_v57 = vld [vmem:[%s1966_s4 + $0xe4] sm:$0xf] }
 0x554   :  { %656 = vrot.lane.b32.xlu0 %v627_v58, %s1473_s1 }
 0x559   :  { %v628_v59 = vpop.f32.mrf.mxu2  ;;  %v646_v60 = vpop.f32.mrf.mxu3 }
 0x55a   :  { %v629_v61 = vadd.f32 %v628_v59, %v547_v54  ;;  %v647_v4 = vadd.f32 %v646_v60, %v548_v3 }
 0x55c   :  { %v665_v62 = vpack.c.bf16 %v629_v61, %v627_v58  ;;  %v1396_v8 = vpack.i.bf16 %v647_v4, %v645_v7  ;;  %v1256_v58 = vld [vmem:[%s1966_s4 + $0xe8] sm:$0xf0]  ;;  %v1238_v7 = vld [vmem:[%s1966_s4 + $0xc0] sm:$0xf] }
 0x55d   :  { %v1259_v60 = vor.u32 %v1342_v57, %v1256_v58  ;;  %v1353_v57 = vld [vmem:[%s1968_s6 + $0x58] sm:$0xff]  ;;  %v1352_v58 = vld [vmem:[%s1968_s6 + $0x50] sm:$0xff] }
 0x561   :  { %v631_v63 = vpop.f32.mrf.mxu2  ;;  %v649_v0 = vpop.f32.mrf.mxu3 }
 0x562   :  { %v632_v1 = vadd.f32 %v631_v63, %v547_v54  ;;  %v650_v9 = vadd.f32 %v649_v0, %v548_v3  ;;  %v1254_v54 = vld [vmem:[%s1966_s4 + $0xe0] sm:$0xf]  ;;  %v1340_v0 = vld [vmem:[%s1966_s4 + $0xd4] sm:$0xf] }
 0x563   :  { %v1255_v59 = vor.u32 %v1343_v56, %v1254_v54 }
 0x564   :  { %v1391_v2 = vpack.i.bf16 %v632_v1, %v629_v61  ;;  %v1246_v61 = vld [vmem:[%s1966_s4 + $0xd0] sm:$0xf] }
 0x566   :  { %1392 = vrot.lane.b32.xlu2 %v1391_v2, %s1473_s1 }
 0x569   :  { %v633_v5 = vpop.f32.mrf.mxu2  ;;  %v651_v6 = vpop.f32.mrf.mxu3 }
 0x56e   :  { %1397 = vrot.lane.b32.xlu2 %v1396_v8, %s1471_s3  ;;  %v1339_v8 = vld [vmem:[%s1966_s4 + $0xc4] sm:$0xf0] }
 0x576   :  { %787 = vrot.lane.b32.xlu2 %v650_v9, %s1471_s3  ;;  %v1338_v9 = vld [vmem:[%s1966_s4 + $0xc4] sm:$0xf] }
 0x5c0   :  { %v1393_v10 = vpop.permute.xlu2 %1392 }
 0x5c1   :  { %v1395_v11 = vunpack.i.h.bf16 %v1393_v10  ;;  %v1394_v12 = vunpack.i.l.bf16 %v1393_v10  ;;  %v1239_v10 = vor.u32 %v1339_v8, %v1238_v7 }
 0x5c3   :  { %v667_v13 = vpack.c.bf16 %v1395_v11, %v1394_v12  ;;  %v1240_v11 = vld [vmem:[%s1966_s4 + $0xc8] sm:$0xf0] }
 0x5c4   :  { %v1243_v12 = vor.u32 %v1338_v9, %v1240_v11 }
 0x5c5   :  { %673 = vmatpush.bf16.msrb.mxu0 %v667_v13 }
 0x5c6   :  { %v657_v14 = vpop.permute.xlu0 %656 }
 0x5c7   :  { %v666_v15 = vpack.c.bf16 %v657_v14, %v632_v1  ;;  %v1248_v1 = vld [vmem:[%s1966_s4 + $0xd8] sm:$0xf0] }
 0x5c8   :  { %v1251_v3 = vor.u32 %v1340_v0, %v1248_v1  ;;  %v1398_v13 = vpop.permute.xlu2 %1397 }
 0x5c9   :  { %674 = vmatpush.bf16.msrb.mxu0 %v666_v15  ;;  %v1400_v14 = vunpack.i.h.bf16 %v1398_v13  ;;  %v1399_v15 = vunpack.i.l.bf16 %v1398_v13 }
 0x5cd   :  { %675 = vmatpush.bf16.msrb.mxu0 %v665_v62  ;;  %v1341_v62 = vld [vmem:[%s1966_s4 + $0xd4] sm:$0xf0] }
 0x5ce   :  { %v1247_v2 = vor.u32 %v1341_v62, %v1246_v61 }
 0x5d0   :  { %1193 = vmatmul.msk.bf16.vlgmr.msrb.gmra.mxu0 %vm124_vm11, %v1672_v44 }
 0x5d1   :  { %719 = vmatpush.bf16.msra.mxu0 %v1337_v16 }
 0x5d5   :  { %720 = vmatpush.bf16.msra.mxu0 %v1336_v17 }
 0x5d9   :  { %721 = vmatpush.bf16.msra.mxu0 %v1335_v18 }
 0x5dd   :  { %722 = vmatpush.bf16.msra.mxu0 %v1334_v19 }
 0x64d   :  { %v677_v20 = vpop.f32.mrf.mxu0 }
 0x64e   :  { %v682_v22 = vmul.f32 %v677_v20, %v1697_v39 }
 0x655   :  { %v679_v21 = vpop.f32.mrf.mxu0 }
 0x656   :  { %v683_v23 = vmul.f32 %v679_v21, %v1699_v40 }
 0x658   :  { %v684_v24 = vpack.c.bf16 %v683_v23, %v682_v22 }
 0x65a   :  { %1210 = vmatmul.msk.bf16.vlgmr.msra.gmra.mxu0 %vm263_vm9, %v684_v24 }
 0x6d7   :  { %v724_v25 = vpop.f32.mrf.mxu0 }
 0x6d8   :  { %v725_v29 = vadd.f32 %v1412_v27, %v724_v25  ;;  %v788_v25 = vpop.permute.xlu2 %787 }
 0x6df   :  { %v726_v28 = vpop.f32.mrf.mxu0 }
 0x6e0   :  { %v727_v30 = vadd.f32 %v1412_v27, %v726_v28 }
 0x6e2   :  { %v755_v31 = vpack.c.bf16 %v727_v30, %v725_v29  ;;  %v1223_v30 = vld [vmem:[%s1967_s5 + $0x4] sm:$0x3] }
 0x6e4   :  { %763 = vmatpush.bf16.msra.mxu2 %v755_v31  ;;  %v814_v31 = vperm.slane %v1223_v30, 1 }
 0x6e7   :  { %1233 = vmatmul.msk.bf16.vlgmr.msra.gmra.mxu2 %vm202_vm4, %v1560_v26  ;;  %v1348_v26 = vld [vmem:[%s1966_s4 + $0x114] sm:$0xf] }
 0x6f7   :  { %1234 = vmatmul.msk.bf16.gmra.mxu2 %vm202_vm4, %v1568_v38  ;;  %v1279_v38 = vor.u32 %v1349_v35, %v1278_v34  ;;  %v813_v34 = vperm.slane %v1223_v30, 0 }
 0x6f9   :  { %885 = vmatpush.bf16.msra.mxu3 %v1279_v38 }
 0x6fd   :  { %886 = vmatpush.bf16.msra.mxu3 %v1271_v46 }
 0x701   :  { %887 = vmatpush.bf16.msra.mxu3 %v1263_v55 }
 0x705   :  { %888 = vmatpush.bf16.msra.mxu3 %v1255_v59  ;;  %v1351_v59 = vld [vmem:[%s1968_s6 + $0x48] sm:$0xff] }
 0x707   :  { %1235 = vmatmul.msk.bf16.gmra.mxu2 %vm202_vm4, %v1572_v45  ;;  %v1280_v45 = vld [vmem:[%s1966_s4 + $0x118] sm:$0xf0] }
 0x708   :  { %v1283_v41 = vor.u32 %v1348_v26, %v1280_v45 }
 0x709   :  { %889 = vmatpush.bf16.msra.mxu3 %v1247_v2 }
 0x70a   :  { %903 = vmatpush.bf16.msrb.mxu0 %v1283_v41 }
 0x70d   :  { %890 = vmatpush.bf16.msra.mxu3 %v1239_v10 }
 0x70e   :  { %904 = vmatpush.bf16.msrb.mxu0 %v1275_v47 }
 0x712   :  { %905 = vmatpush.bf16.msrb.mxu0 %v1267_v53 }
 0x716   :  { %906 = vmatpush.bf16.msrb.mxu0 %v1259_v60  ;;  %v1350_v60 = vld [vmem:[%s1968_s6 + $0x40] sm:$0xff]  ;;  %s1477_s6 = smov 8  }
 0x71a   :  { %907 = vmatpush.bf16.msrb.mxu0 %v1251_v3 }
 0x71e   :  { %908 = vmatpush.bf16.msrb.mxu0 %v1243_v12 }
 0x76a   :  { %v1836_v32 = vpop.f32.mrf.mxu2 }
 0x76b   :  { %v804_v19 = vsel %vm259_vm8, %v1836_v32, %v1399_v15 }
 0x772   :  { %v1838_v33 = vpop.f32.mrf.mxu2 }
 0x773   :  { %v805_v20 = vsel %vm259_vm8, %v1838_v33, %v1400_v14 }
 0x77a   :  { %v770_v50 = vpop.f32.mrf.mxu2 }
 0x77b   :  { %v806_v27 = vsel %vm259_vm8, %v770_v50, %v788_v25 }
 0x782   :  { %v772_v63 = vpop.f32.mrf.mxu2 }
 0x78a   :  { %v775_v4 = vpop.f32.mrf.mxu2 }
 0x78b   :  { %v1401_v5 = vpack.i.bf16 %v775_v4, %v772_v63 }
 0x78d   :  { %1402 = vrot.lane.b32.xlu0 %v1401_v5, %s1473_s1 }
 0x792   :  { %v777_v6 = vpop.f32.mrf.mxu2 }
 0x795   :  { %799 = vrot.lane.b32.xlu0 %v777_v6, %s1473_s1 }
 0x7ff   :  { %v1403_v16 = vpop.permute.xlu0 %1402 }
 0x800   :  { %v1405_v17 = vunpack.i.h.bf16 %v1403_v16  ;;  %v1404_v18 = vunpack.i.l.bf16 %v1403_v16 }
 0x802   :  { %v808_v21 = vsel %vm263_vm9, %v805_v20, %v1405_v17  ;;  %v807_v22 = vsel %vm263_vm9, %v804_v19, %v1404_v18 }
 0x803   :  { %v810_v23 = vpack.c.bf16 %v808_v21, %v807_v22 }
 0x805   :  { %1284 = vmatmul.msk.bf16.vlgmr.msra.gmra.mxu3 %vm334_vm10, %v810_v23  ;;  %1286 = vmatmul.msk.bf16.vlgmr.msrb.gmra.mxu0 %vm334_vm10, %v810_v23 }
 0x807   :  { %v800_v24 = vpop.permute.xlu0 %799 }
 0x808   :  { %v809_v28 = vsel %vm263_vm9, %v806_v27, %v800_v24 }
 0x809   :  { %v811_v29 = vpack.c.bf16 %v809_v28, %v809_v28 }
 0x815   :  { %1285 = vmatmul.msk.bf16.gmra.mxu3 %vm334_vm10, %v811_v29  ;;  %1287 = vmatmul.msk.bf16.gmra.mxu0 %vm334_vm10, %v811_v29 }
 0x882   :  { %v910_v32 = vpop.f32.mrf.mxu0 }
 0x883   :  { %v911_v33 = vadd.f32 %v910_v32, %v814_v31 }
 0x885   :  { %997 = vst.msk [vmem:[#allocation4] sm:$0xff] %vm259_vm8, %v911_v33 }
 0x888   :  { %v892_v35 = vpop.f32.mrf.mxu3 }
 0x889   :  { %v893_v26 = vadd.f32 %v892_v35, %v813_v34 }
 0x88a   :  { %v912_v38 = vpop.f32.mrf.mxu0 }
 0x88b   :  { %v913_v45 = vadd.f32 %v912_v38, %v814_v31  ;;  %922 = vrot.lane.b32.xlu0 %v893_v26, %s1473_s1 }
 0x88d   :  { %998 = vst.msk [vmem:[#allocation4 + $0x8] sm:$0xff] %vm259_vm8, %v913_v45 }
 0x890   :  { %v894_v36 = vpop.f32.mrf.mxu3 }
 0x891   :  { %v895_v37 = vadd.f32 %v894_v36, %v813_v34 }
 0x892   :  { %v915_v41 = vpop.f32.mrf.mxu0 }
 0x893   :  { %v931_v42 = vpack.c.bf16 %v895_v37, %v893_v26  ;;  %v916_v43 = vadd.f32 %v915_v41, %v814_v31 }
 0x895   :  { %999 = vst.msk [vmem:[#allocation4 + $0x10] sm:$0xff] %vm259_vm8, %v916_v43 }
 0x896   :  { %1025 = dma.vmem_to_hbm [thread:$0]  %s1018_s20, 384, %s1020_s23, [#allocation5], %s1476_s24, %s1476_s24, %s1477_s6  }
 0x898   :  { %v897_v46 = vpop.f32.mrf.mxu3 }
 0x899   :  { %v898_v47 = vadd.f32 %v897_v46, %v813_v34 }
 0x89a   :  { %v917_v49 = vpop.f32.mrf.mxu0 }
 0x89b   :  { %v1406_v48 = vpack.i.bf16 %v898_v47, %v895_v37 }
 0x89d   :  { %1407 = vrot.lane.b32.xlu2 %v1406_v48, %s1473_s1 }
 0x8a0   :  { %v899_v50 = vpop.f32.mrf.mxu3 }
 0x8f7   :  { %v1408_v51 = vpop.permute.xlu2 %1407 }
 0x8f8   :  { %v1410_v52 = vunpack.i.h.bf16 %v1408_v51  ;;  %v1409_v55 = vunpack.i.l.bf16 %v1408_v51 }
 0x8fa   :  { %v933_v53 = vpack.c.bf16 %v1410_v52, %v1409_v55 }
 0x8fc   :  { %939 = vmatpush.bf16.msra.mxu1 %v933_v53 }
 0x8fd   :  { %v923_v54 = vpop.permute.xlu0 %922 }
 0x8fe   :  { %v932_v56 = vpack.c.bf16 %v923_v54, %v898_v47 }
 0x900   :  { %940 = vmatpush.bf16.msra.mxu1 %v932_v56 }
 0x904   :  { %941 = vmatpush.bf16.msra.mxu1 %v931_v42 }
 0x907   :  { %1288 = vmatmul.msk.bf16.vlgmr.msra.gmra.mxu1 %vm124_vm11, %v1672_v44 }
 0x908   :  { %985 = vmatpush.bf16.msrb.mxu1 %v1353_v57 }
 0x90c   :  { %986 = vmatpush.bf16.msrb.mxu1 %v1352_v58 }
 0x910   :  { %987 = vmatpush.bf16.msrb.mxu1 %v1351_v59 }
 0x914   :  { %988 = vmatpush.bf16.msrb.mxu1 %v1350_v60 }
 0x984   :  { %v943_v61 = vpop.f32.mrf.mxu1 }
 0x985   :  { %v948_v63 = vmul.f32 %v943_v61, %v1697_v39  ;;  %v1413_v39 = vld [vmem:[%s1969_s7 + $0x2] ss:$0 sm:$0xff] }
 0x98c   :  { %v945_v62 = vpop.f32.mrf.mxu1 }
 0x98d   :  { %v949_v44 = vmul.f32 %v945_v62, %v1699_v40 }
 0x98f   :  { %v950_v0 = vpack.c.bf16 %v949_v44, %v948_v63 }
 0x991   :  { %1305 = vmatmul.msk.bf16.vlgmr.msrb.gmra.mxu1 %vm263_vm9, %v950_v0 }
 0xa0e   :  { %v990_v1 = vpop.f32.mrf.mxu1 }
 0xa0f   :  { %v991_v40 = vadd.f32 %v1413_v39, %v990_v1 }
 0xa11   :  { %995 = vst.msk [vmem:[#allocation2] sm:$0xff] %vm259_vm8, %v991_v40 }
 0xa16   :  { %v992_v2 = vpop.f32.mrf.mxu1 }
 0xa17   :  { %v993_v3 = vadd.f32 %v1413_v39, %v992_v2 }
 0xa19   :  { %996 = vst.msk [vmem:[#allocation2 + $0x8] sm:$0xff] %vm259_vm8, %v993_v3 }
 0xa1a   :  { %1012 = dma.vmem_to_hbm [thread:$0]  %s1005_s27, 256, %s1007_s28, [#allocation3], %s1476_s24, %s1476_s24, %s1477_s6  }
 0xa1b   :  { %1466 = dma.done.wait [#allocation3], 256  }
 0xa1c   :  { %1467 = vsyncadd [#allocation3], 4294967040 }
 0xa1d   :  { %1468 = dma.done.wait [#allocation5], 384  }
 0xa1e   :  { %1469 = vsyncadd [#allocation5], 4294966912 }
 0xa1f   :  { %1034 = vsyncpa [#allocation3], 1 }
 0xa20   :  { %1035 = vsyncpa [#allocation5], 1 }

</bundles_post_ra>
